<compile_context>
chip_gen: v7x
topology: tpu7x:2x2x1
jax: 0.10.0
libtpu: 0.0.40
codegen_flags: <defaults>
</compile_context>

<pallas_src>
import jax
import jax.numpy as jnp
from jax.experimental import pallas as pl
from jax.experimental.pallas import tpu as pltpu


def gcn_kernel(x_ref, k_ref, b_ref, o_ref):
    # x_ref: (1, C, Tt, V)     native-layout activation block
    # k_ref: (C, V, Cout*V)    fused weight  K[c, v, o*V + w] = W[o, c] * A[v, w]
    # b_ref: (1, Cout*V)       bias row (b[o] repeated over w)
    # o_ref: (1, Tt, Cout*V)   lane-dense output block
    C = x_ref.shape[1]
    acc = jnp.zeros((x_ref.shape[2], o_ref.shape[2]), jnp.float32)
    for c in range(C):  # static unroll (C is small); each dot has M = Tt (folded batch)
        acc += jnp.dot(x_ref[0, c], k_ref[c], preferred_element_type=jnp.float32)
    y = acc + b_ref[...]
    o_ref[0] = jnp.maximum(y, 0.0).astype(o_ref.dtype)


def _pick_t_block(T, target=512):
    if T <= target:
        return T
    # largest multiple of 8 that divides T and is <= target; fall back to full T
    for tb in range(target, 7, -1):
        if T % tb == 0 and tb % 8 == 0:
            return tb
    return T


def graph_convolution(x, A, W, b, *, t_block=None):
    """x: (N, C, T, V); A: (V, V); W: (Cout, C); b: (Cout,). Returns (N, Cout, T, V)."""
    N, C, T, V = x.shape
    Cout = W.shape[0]
    OutW = Cout * V
    if t_block is None:
        t_block = _pick_t_block(T)

    # Fused weight: K[c, v, o*V + w] = W[o, c] * A[v, w]  (exact elementwise outer product).
    K = (jnp.transpose(W)[:, None, :, None] * A[None, :, None, :]).reshape(C, V, OutW)
    K = K.astype(x.dtype)
    # Lane-dense bias row: b_row[0, o*V + w] = b[o].
    b_row = jnp.repeat(b, V).reshape(1, OutW).astype(x.dtype)

    out_flat = pl.pallas_call(
        gcn_kernel,
        out_shape=jax.ShapeDtypeStruct((N, T, OutW), x.dtype),
        grid_spec=pltpu.PrefetchScalarGridSpec(
            num_scalar_prefetch=0,
            grid=(N, T // t_block),
            in_specs=[
                pl.BlockSpec((1, C, t_block, V), lambda n, t: (n, 0, t, 0)),  # x, native NCHW
                pl.BlockSpec((C, V, OutW), lambda n, t: (0, 0, 0)),           # K (resident)
                pl.BlockSpec((1, OutW), lambda n, t: (0, 0)),                 # bias (resident)
            ],
            out_specs=pl.BlockSpec((1, t_block, OutW), lambda n, t: (n, t, 0)),
        ),
        compiler_params=pltpu.CompilerParams(
            dimension_semantics=("parallel", "parallel")),
    )(x, K, b_row)

    # (N, T, Cout*V) -> (N, T, Cout, V) is a free reshape; one transpose back to NCHW.
    return out_flat.reshape(N, T, Cout, V).transpose(0, 2, 1, 3)


def reference(x, A, W, b):
    mixed = jnp.einsum("nctv,vw->nctw", x, A)
    y = jnp.einsum("oc,nctv->notv", W, mixed) + b[None, :, None, None]
    return jnp.maximum(y, 0.0)


if __name__ == "__main__":
    # Small shapes consistent with the module's forward.
    N, C, T, V = 2, 4, 16, 16
    Cout = 8

    key = jax.random.PRNGKey(0)
    kx, ka, kw, kb = jax.random.split(key, 4)

    x = jax.random.normal(kx, (N, C, T, V), dtype=jnp.float32)
    # Deterministic synthetic parameters (shapes from __init__):
    A = jax.random.normal(ka, (V, V), dtype=jnp.float32) * 0.1        # nn.Parameter A
    W = jax.random.normal(kw, (Cout, C), dtype=jnp.float32) * 0.1     # Conv2d 1x1 weight (Cout, C, 1, 1) squeezed
    b = jax.random.normal(kb, (Cout,), dtype=jnp.float32) * 0.1       # Conv2d bias

    out = graph_convolution(x, A, W, b)
    out = jax.block_until_ready(out)

    ref = reference(x, A, W, b)
    assert out.shape == (N, Cout, T, V), out.shape
    err = float(jnp.max(jnp.abs(out - ref)))
    assert jnp.allclose(out, ref, atol=2e-4, rtol=2e-4), err

    print("KERNEL_OK")
</pallas_src>

<mosaic_0001>
module attributes {stable_mosaic.version = 11 : i64} {
  func.func @gcn_kernel(%arg0: i32, %arg1: i32, %arg2: memref<1x4x16x16xf32, #tpu.memory_space<vmem>>, %arg3: memref<4x16x128xf32, #tpu.memory_space<vmem>>, %arg4: memref<1x128xf32, #tpu.memory_space<vmem>>, %arg5: memref<1x16x128xf32, #tpu.memory_space<vmem>>) attributes {dimension_semantics = [#tpu.dimension_semantics<parallel>, #tpu.dimension_semantics<parallel>], iteration_bounds = array<i64: 2, 1>, scalar_prefetch = 0 : i64, scratch_operands = 0 : i64, tpu.core_type = #tpu.core_type<tc>, window_params = [{transform_indices = @transform_0, window_bounds = array<i64: 1, 4, 16, 16>}, {pipeline_mode = #tpu.pipeline_mode<synchronous>, transform_indices = @transform_1, window_bounds = array<i64: 4, 16, 128>}, {pipeline_mode = #tpu.pipeline_mode<synchronous>, transform_indices = @transform_2, window_bounds = array<i64: 1, 128>}, {transform_indices = @transform_3, window_bounds = array<i64: 1, 16, 128>}]} {
    %cst = arith.constant 0.000000e+00 : f32
    %0 = vector.broadcast %cst : f32 to vector<16x128xf32>
    %c0 = arith.constant 0 : index
    %c0_0 = arith.constant 0 : index
    %c0_1 = arith.constant 0 : index
    %c0_2 = arith.constant 0 : index
    %1 = vector.load %arg2[%c0, %c0_0, %c0_1, %c0_2] : memref<1x4x16x16xf32, #tpu.memory_space<vmem>>, vector<1x1x16x16xf32>
    %2 = vector.shape_cast %1 : vector<1x1x16x16xf32> to vector<16x16xf32>
    %c0_3 = arith.constant 0 : index
    %c0_4 = arith.constant 0 : index
    %c0_5 = arith.constant 0 : index
    %3 = vector.load %arg3[%c0_3, %c0_4, %c0_5] : memref<4x16x128xf32, #tpu.memory_space<vmem>>, vector<1x16x128xf32>
    %4 = vector.shape_cast %3 : vector<1x16x128xf32> to vector<16x128xf32>
    %cst_6 = arith.constant dense<0.000000e+00> : vector<16x128xf32>
    %5 = tpu.matmul %2, %4, %cst_6 {dimension_numbers = #tpu.dot_dimension_numbers<[1], [0], [0], [1], [0, 0, 1, 1], [], []>} : vector<16x16xf32>, vector<16x128xf32>, vector<16x128xf32> -> vector<16x128xf32>
    %6 = arith.addf %0, %5 : vector<16x128xf32>
    %c0_7 = arith.constant 0 : index
    %c1 = arith.constant 1 : index
    %c0_8 = arith.constant 0 : index
    %c0_9 = arith.constant 0 : index
    %7 = vector.load %arg2[%c0_7, %c1, %c0_8, %c0_9] : memref<1x4x16x16xf32, #tpu.memory_space<vmem>>, vector<1x1x16x16xf32>
    %8 = vector.shape_cast %7 : vector<1x1x16x16xf32> to vector<16x16xf32>
    %c1_10 = arith.constant 1 : index
    %c0_11 = arith.constant 0 : index
    %c0_12 = arith.constant 0 : index
    %9 = vector.load %arg3[%c1_10, %c0_11, %c0_12] : memref<4x16x128xf32, #tpu.memory_space<vmem>>, vector<1x16x128xf32>
    %10 = vector.shape_cast %9 : vector<1x16x128xf32> to vector<16x128xf32>
    %cst_13 = arith.constant dense<0.000000e+00> : vector<16x128xf32>
    %11 = tpu.matmul %8, %10, %cst_13 {dimension_numbers = #tpu.dot_dimension_numbers<[1], [0], [0], [1], [0, 0, 1, 1], [], []>} : vector<16x16xf32>, vector<16x128xf32>, vector<16x128xf32> -> vector<16x128xf32>
    %12 = arith.addf %6, %11 : vector<16x128xf32>
    %c0_14 = arith.constant 0 : index
    %c2 = arith.constant 2 : index
    %c0_15 = arith.constant 0 : index
    %c0_16 = arith.constant 0 : index
    %13 = vector.load %arg2[%c0_14, %c2, %c0_15, %c0_16] : memref<1x4x16x16xf32, #tpu.memory_space<vmem>>, vector<1x1x16x16xf32>
    %14 = vector.shape_cast %13 : vector<1x1x16x16xf32> to vector<16x16xf32>
    %c2_17 = arith.constant 2 : index
    %c0_18 = arith.constant 0 : index
    %c0_19 = arith.constant 0 : index
    %15 = vector.load %arg3[%c2_17, %c0_18, %c0_19] : memref<4x16x128xf32, #tpu.memory_space<vmem>>, vector<1x16x128xf32>
    %16 = vector.shape_cast %15 : vector<1x16x128xf32> to vector<16x128xf32>
    %cst_20 = arith.constant dense<0.000000e+00> : vector<16x128xf32>
    %17 = tpu.matmul %14, %16, %cst_20 {dimension_numbers = #tpu.dot_dimension_numbers<[1], [0], [0], [1], [0, 0, 1, 1], [], []>} : vector<16x16xf32>, vector<16x128xf32>, vector<16x128xf32> -> vector<16x128xf32>
    %18 = arith.addf %12, %17 : vector<16x128xf32>
    %c0_21 = arith.constant 0 : index
    %c3 = arith.constant 3 : index
    %c0_22 = arith.constant 0 : index
    %c0_23 = arith.constant 0 : index
    %19 = vector.load %arg2[%c0_21, %c3, %c0_22, %c0_23] : memref<1x4x16x16xf32, #tpu.memory_space<vmem>>, vector<1x1x16x16xf32>
    %20 = vector.shape_cast %19 : vector<1x1x16x16xf32> to vector<16x16xf32>
    %c3_24 = arith.constant 3 : index
    %c0_25 = arith.constant 0 : index
    %c0_26 = arith.constant 0 : index
    %21 = vector.load %arg3[%c3_24, %c0_25, %c0_26] : memref<4x16x128xf32, #tpu.memory_space<vmem>>, vector<1x16x128xf32>
    %22 = vector.shape_cast %21 : vector<1x16x128xf32> to vector<16x128xf32>
    %cst_27 = arith.constant dense<0.000000e+00> : vector<16x128xf32>
    %23 = tpu.matmul %20, %22, %cst_27 {dimension_numbers = #tpu.dot_dimension_numbers<[1], [0], [0], [1], [0, 0, 1, 1], [], []>} : vector<16x16xf32>, vector<16x128xf32>, vector<16x128xf32> -> vector<16x128xf32>
    %24 = arith.addf %18, %23 : vector<16x128xf32>
    %c0_28 = arith.constant 0 : index
    %c0_29 = arith.constant 0 : index
    %25 = vector.load %arg4[%c0_28, %c0_29] : memref<1x128xf32, #tpu.memory_space<vmem>>, vector<1x128xf32>
    %26 = vector.broadcast %25 : vector<1x128xf32> to vector<16x128xf32>
    %27 = arith.addf %24, %26 : vector<16x128xf32>
    %cst_30 = arith.constant 0.000000e+00 : f32
    %28 = vector.broadcast %cst_30 : f32 to vector<16x128xf32>
    %29 = arith.maximumf %27, %28 : vector<16x128xf32>
    %c0_31 = arith.constant 0 : index
    %c0_32 = arith.constant 0 : index
    %c0_33 = arith.constant 0 : index
    %30 = vector.load %arg5[%c0_31, %c0_32, %c0_33] : memref<1x16x128xf32, #tpu.memory_space<vmem>>, vector<1x16x128xf32>
    %31 = vector.shape_cast %30 : vector<1x16x128xf32> to vector<16x128xf32>
    %32 = vector.shape_cast %29 : vector<16x128xf32> to vector<1x16x128xf32>
    tpu.vector_store %arg5[%c0_31, %c0_32, %c0_33], %32 {strides = array<i32>} : memref<1x16x128xf32, #tpu.memory_space<vmem>>, vector<1x16x128xf32>,
    return
  }
  func.func @transform_0(%arg0: i32, %arg1: i32) -> (i32, i32, i32, i32) {
    %c0_i32 = arith.constant 0 : i32
    %c0_i32_0 = arith.constant 0 : i32
    %c0_i32_1 = arith.constant 0 : i32
    return %arg0, %c0_i32, %arg1, %c0_i32_0 : i32, i32, i32, i32
  }
  func.func @transform_1(%arg0: i32, %arg1: i32) -> (i32, i32, i32) {
    %c0_i32 = arith.constant 0 : i32
    %c0_i32_0 = arith.constant 0 : i32
    %c0_i32_1 = arith.constant 0 : i32
    %c0_i32_2 = arith.constant 0 : i32
    return %c0_i32, %c0_i32_0, %c0_i32_1 : i32, i32, i32
  }
  func.func @transform_2(%arg0: i32, %arg1: i32) -> (i32, i32) {
    %c0_i32 = arith.constant 0 : i32
    %c0_i32_0 = arith.constant 0 : i32
    %c0_i32_1 = arith.constant 0 : i32
    return %c0_i32, %c0_i32_0 : i32, i32
  }
  func.func @transform_3(%arg0: i32, %arg1: i32) -> (i32, i32, i32) {
    %c0_i32 = arith.constant 0 : i32
    %c0_i32_0 = arith.constant 0 : i32
    return %arg0, %arg1, %c0_i32 : i32, i32, i32
  }
}

</mosaic_0001>

<bundles_post_ra>
// kernel: tpu_custom_call.1
= control target key start
LH: loop header
LB: loop body
LE: loop exit
PB: predicated region body
PF: predicated region fallthrough
CT: control target
= control target key end

     0   :  { %8 = vsyncpa [#allocation3], 0  ;;  %s1298_s0 = inlined_call_operand.hbm [shape: f32[2,4,16,16], index: 0, kind: input, shape index: {}]   ;;  %s1299_s1 = inlined_call_operand.hbm [shape: f32[4,16,128], index: 1, kind: input, shape index: {}]   ;;  %s1300_s2 = inlined_call_operand.vmem [shape: f32[1,128], index: 2, kind: input, shape index: {}]   ;;  %s1301_s3 = inlined_call_operand.hbm [shape: f32[2,16,128], index: 3, kind: output, shape index: {}]  }
   0x1   :  { %10 = vsyncpa [#allocation3 + $0x1], 0 }
   0x2   :  { %11 = vsyncpa [#allocation6], 0 }
   0x3   :  { %12 = vsyncpa [#allocation4], 0 }
   0x4   :  { %14 = vsyncpa [#allocation4 + $0x1], 0  ;;  %s1051_s12 = smov 0   ;;  %s1053_s13 = smov 0  }
   0x5   :  { %s1055_s14 = smov 0   ;;  %s1057_s15 = smov 0  }
   0x6   :  { %s1059_s16 = smov 0   ;;  %s1061_s17 = smov 0  }
   0x7 LB: > { %s701_s18 = sadd.s32 4294967295, %s1022_s17   ;;  %s702_s19 = sadd.s32 4294967294, %s1022_s17   ;;  %s1022_s17 = sphi %s1061_s17, %s20_s17   ;;  %s1018_s16 = sphi %s1059_s16, %s1325_s16   ;;  %s1014_s15 = sphi %s1057_s15, %s1324_s15   ;;  %s1010_s14 = sphi %s1055_s14, %s1323_s14   ;;  %s1006_s13 = sphi %s1053_s13, %s1322_s13   ;;  %s1002_s12 = sphi %s1051_s12, %s1321_s12  }
   0x8   : > { %p54_p0 = scmp.ne.s32.totalorder %s1006_s13, %s1002_s12  ;;  %p1085_p1 = scmp.eq.s32.totalorder %s701_s18, 0 }
   0x9   : > { %p1089_p2 = scmp.eq.s32.totalorder %s701_s18, 1  ;;  %p128_p3 = scmp.eq.s32.totalorder %s702_s19, 1 }
   0xa   : > { %s1306_s20 = scalar_select %p1085_p1, 1, 0 }
   0xb   : > { %s1307_s21 = scalar_select %p1089_p2, 1, 0 }
   0xc   : > { %p1095_p4 = por %p1085_p1, %p54_p0  ;;  %p703_p5 = scmp.ge.s32.totalorder %s1022_s17, 1 }
   0xd   : > { %p1100_p6 = por %p128_p3, %p54_p0  ;;  %p135_p7 = scmp.lt.s32.totalorder %s1022_s17, 3 }
   0xe   : > { %s1308_s22 = scalar_select %p1095_p4, 1, 0 }
   0xf   : > { %s1309_s23 = scalar_select %p1100_p6, 1, 0 }
  0x10   : > { %p1105_p8 = pnand %p703_p5, %p135_p7  ;;  %s1024_s25 = smov [#allocation5]  }
  0x11   : > { %s147_s26 = sshll.u32 %s1024_s25, 4  ;;  %s32_s28 = sadd.s32 1, %s1018_s16  ;;  %s148_s26 = int_to_ptr.vmem [resolvable:$true] %s147_s26 }
  0x12   : > { %s1310_s24 = scalar_select %p1105_p8, 1, 0 }
  0x13   : > { %p809_p9 = pneg %p1105_p8  ;;  %s878_s4 = scalar_lea.hbm %s1299_s1, 1024 }
  0x14   : > { %p879_p12 = scmp.ne.s32.totalorder %s1299_s1, %s878_s4  ;;  %p885_p5 = scmp.lt.u32.totalorder %s878_s4, %s1299_s1 }
  0x15   : > { %p1114_p11 = pnand %p809_p9, %p1085_p1 }
  0x17   : > { %p880_p13 = pneg %p1114_p11 }
  0x19   : > { %p881_p0 = pnand %p880_p13, %p879_p12 }
  0x1b   : > { %p882_p3 = pneg %p881_p0 }
  0x1d   : > { %p887_p7 = pnand %p885_p5, %p882_p3 }
  0x1f   : > { %890 = shalt.err (!%p887_p7)
}
  0x20   : > { %s891_s9 = scalar_lea.vmem %s148_s26, 1024  ;;  %p899_p1 = scmp.lt.s32.totalorder %s148_s26, %s148_s26 }
  0x21   : > { %p892_p9 = scmp.ne.s32.totalorder %s148_s26, %s891_s9  ;;  %p900_p4 = scmp.lt.s32.totalorder %s891_s9, %s891_s9 }
  0x23   : > { %p894_p10 = pnand %p892_p9, %p880_p13  ;;  %p901_p8 = por %p900_p4, %p899_p1 }
  0x25   : > { %p895_p6 = pneg %p894_p10 }
  0x27   : > { %p902_p2 = pnand %p901_p8, %p895_p6 }
  0x29   : > { %905 = shalt.err (!%p902_p2)
}
  0x2a   : > { %s1025_s10 = smov 128   ;;  %s1026_s11 = smov 8  }
  0x2b   : > { %812 = dma.hbm_to_vmem [thread:$0]  (!%p1114_p11), %s1299_s1, 1024, %s148_s26, [#allocation6], %s1025_s10, %s1025_s10, %s1026_s11  }
  0x2c   : > { %p34_p1 = scmp.ge.s32.totalorder %s32_s28, 2  ;;  %s41_s25 = sadd.s32 1, %s1010_s14 }
  0x2d   : > { %p48_p2 = scmp.ne.s32.totalorder %s1010_s14, %s1006_s13  ;;  %p49_p4 = scmp.eq.s32.totalorder %s1022_s17, 0 }
  0x2e   : > { %s1327_s28 = smov (%p34_p1, %s32_s28), 0  ;;  %p1313_p8 = scmp.ne.s32.totalorder %s1307_s21, 0 }
  0x2f   : > { %p1144_p6 = por %p49_p4, %p48_p2  ;;  %s36_s30 = ssub.s32 %s1018_s16, %s1327_s28 }
  0x30   : > { %p1150_p10 = por %p1313_p8, %p48_p2  ;;  %p822_p12 = scmp.lt.s32.totalorder %s1022_s17, 2 }
  0x31   : > { %p39_p11 = scmp.eq.s32.totalorder %s36_s30, 0  ;;  %s164_s26 = sand.u32 1, %s1010_s14  }
  0x32   : > { %s706_s4 = sshll.u32 %s164_s26, 6  ;;  %s733_s6 = sshll.u32 %s1018_s16, 10 }
  0x33   : > { %s1159_s5 = scalar_select %p39_p11, %s1010_s14, %s41_s25  }
  0x34   : > { %s1165_s9 = scalar_lea.hbm %s1298_s0, %s733_s6  ;;  %s168_s21 = scalar_lea.vmem [#allocation2], %s706_s4 }
  0x35   : > { %s177_s18 = sshll.u32 %s168_s21, 4  ;;  %p1171_p13 = pnand %p822_p12, %p1144_p6  ;;  %s1167_s18 = int_to_ptr.vmem [resolvable:$true] %s177_s18 }
  0x36   : > { %s1175_s25 = scalar_lea.sflag [#allocation3], %s164_s26  ;;  %s906_s30 = scalar_lea.hbm %s1165_s9, 1024 }
  0x37   : > { %p907_p0 = scmp.ne.s32.totalorder %s1165_s9, %s906_s30  ;;  %p908_p3 = pneg %p1171_p13 }
  0x38   : > { %s911_s29 = scalar_lea.hbm %s1298_s0, 2048  ;;  %p912_p9 = scmp.lt.u32.totalorder %s1165_s9, %s1298_s0 }
  0x39   : > { %p909_p5 = pnand %p908_p3, %p907_p0  ;;  %p913_p1 = scmp.lt.u32.totalorder %s911_s29, %s906_s30 }
  0x3a   : > { %p915_p4 = scmp.lt.u32.totalorder %s906_s30, %s1165_s9 }
  0x3b   : > { %p910_p7 = pneg %p909_p5  ;;  %p914_p2 = por %p913_p1, %p912_p9 }
  0x3d   : > { %p916_p6 = por %p915_p4, %p914_p2 }
  0x3f   : > { %p917_p8 = pnand %p916_p6, %p910_p7 }
  0x41   : > { %920 = shalt.err (!%p917_p8)
}
  0x42   : > { %s921_s26 = scalar_lea.vmem %s1167_s18, 1024  ;;  %s1027_s21 = smov [#allocation2]  }
  0x43   : > { %p922_p12 = scmp.ne.s32.totalorder %s1167_s18, %s921_s26  ;;  %s926_s4 = sshll.u32 %s1027_s21, 4  ;;  %s927_s4 = int_to_ptr.vmem [resolvable:$false] %s926_s4 }
  0x44   : > { %s928_s6 = scalar_lea.vmem %s927_s4, 2048  ;;  %p929_p5 = scmp.lt.s32.totalorder %s1167_s18, %s927_s4 }
  0x45   : > { %p924_p11 = pnand %p922_p12, %p908_p3  ;;  %p930_p9 = scmp.lt.s32.totalorder %s928_s6, %s921_s26 }
  0x47   : > { %p925_p0 = pneg %p924_p11  ;;  %p931_p1 = por %p930_p9, %p929_p5 }
  0x49   : > { %p932_p2 = pnand %p931_p1, %p925_p0 }
  0x4b   : > { %935 = shalt.err (!%p932_p2)
}
  0x4c   : > { %816 = dma.hbm_to_vmem [thread:$0]  (!%p1171_p13), %s1165_s9, 1024, %s1167_s18, %s1175_s25, %s1025_s10, %s1025_s10, %s1026_s11  }
  0x4d   : > { %p1316_p3 = scmp.ne.s32.totalorder %s1310_s24, 0 }
  0x4e   : > { %s1209_s30 = sand.u32 (!%p1316_p3), 1, %s1006_s13   ;;  %p1317_p7 = scmp.ne.s32.totalorder (!%p1316_p3), %s1308_s22, 0 }
  0x4f   : > { %189 = sbr.rel (%p1316_p3) target bundleno = 340 (0x154), region = 32  ;;  %s710_s29 = sshll.u32 (!%p1316_p3), %s1209_s30, 6 }
  0x50   : > { %s192_s7 = scalar_lea.sflag (!%p1316_p3), [#allocation3], %s1209_s30  ;;  %s1213_s8 = scalar_lea.vmem (!%p1316_p3), [#allocation2], %s710_s29 }
  0x56   : > { %989 = dma.done.wait (%p1317_p7), %s192_s7, 1024  }
  0x57   : > { %991 = vsyncadd (%p1317_p7), %s192_s7, 4294966272  ;;  %p1318_p13 = scmp.ne.s32.totalorder %s1306_s20, 0 }
  0x59   : > { %993 = dma.done.wait (%p1318_p13), [#allocation6], 1024  }
  0x5a   : > { %995 = vsyncadd (%p1318_p13), [#allocation6], 4294966272  ;;  %vm234_vm0 = vcmask 130048   ;;  %v232_v0 = vld [vmem:[#allocation5 + $0x10] sm:$0xff]  ;;  %v233_v1 = vld [vmem:[#allocation5 + $0x18] sm:$0xff]  ;;  %s712_s20 = sshll.u32 %s1209_s30, 4 }
  0x5b   : > { %v401_v2 = vld [vmem:[#allocation5 + $0x20] sm:$0xff]  ;;  %v779_v3 = vpack.c.bf16 %v233_v1, %v232_v0  ;;  %v402_v4 = vld [vmem:[#allocation5 + $0x28] sm:$0xff]  ;;  %v713_v5 = vld [vmem:[%s1213_s8 + $0x10] sm:$0xff]  ;;  %s221_s10 = scalar_lea.vmem [#allocation7], %s712_s20  ;;  %s734_s9 = sshll.u32 %s1014_s15, 8 }
  0x5c   : > { %v719_v6 = vld [vmem:[%s1213_s8 + $0x20] sm:$0xff]  ;;  %v787_v7 = vpack.c.bf16 %v402_v4, %v401_v2  ;;  %755 = vmatprep.mubr.msk.f32.mxu1 %vm234_vm0, %v713_v5  ;;  %v227_v9 = vld [vmem:[#allocation5 + $0x8] sm:$0xff]  ;;  %v490_v11 = vld [vmem:[#allocation5 + $0x30] sm:$0xff]  ;;  %s604_s11 = sshll.u32 %s221_s10, 4  ;;  %s1249_s25 = scalar_lea.hbm %s1301_s3, %s734_s9  ;;  %s1244_s11 = int_to_ptr.vmem [resolvable:$true] %s604_s11 }
  0x5d   : > { %769 = vmatprep.mubr.msk.f32.mxu0 %vm234_vm0, %v719_v6  ;;  %v226_v8 = vld [vmem:[#allocation5] sm:$0xff]  ;;  %780 = vmatprep.subr.bf16.mxu1 %v779_v3  ;;  %v491_v12 = vld [vmem:[#allocation5 + $0x38] sm:$0xff]  ;;  %v720_v15 = vld [vmem:[%s1213_s8 + $0x28] sm:$0xff]  ;;  %s589_s26 = scalar_lea.sflag [#allocation4], %s1209_s30  ;;  %s936_s21 = scalar_lea.vmem %s1244_s11, 256 }
  0x5e   : > { %v783_v10 = vpack.c.bf16 %v227_v9, %v226_v8  ;;  %788 = vmatprep.subr.bf16.mxu0 %v787_v7  ;;  %782 = vmatpush3.bf16.msra.mxu1 %v779_v3  ;;  %v714_v13 = vld [vmem:[%s1213_s8 + $0x18] sm:$0xff]  ;;  %v791_v14 = vpack.c.bf16 %v491_v12, %v490_v11  ;;  %v224_v16 = vld [vmem:[%s1213_s8] sm:$0xff]  ;;  %v723_v17 = vld [vmem:[%s1213_s8 + $0x30] sm:$0xff]  ;;  %p937_p4 = scmp.ne.s32.totalorder %s1244_s11, %s936_s21  ;;  %s1028_s15 = smov [#allocation7]  }
  0x5f   : > { %790 = vmatpush3.bf16.msra.mxu0 %v787_v7  ;;  %v225_v18 = vld [vmem:[%s1213_s8 + $0x8] sm:$0xff]  ;;  %v724_v19 = vld [vmem:[%s1213_s8 + $0x38] sm:$0xff]  ;;  %v727_v22 = vld [vmem:[%s1300_s2] ss:$0 sm:$0xff]  ;;  %s940_s4 = sshll.u32 %s1028_s15, 4  ;;  %s941_s4 = int_to_ptr.vmem [resolvable:$false] %s940_s4 }
  0x60   : > { %784 = vmatprep.subr.bf16.mxu1 %v783_v10  ;;  %792 = vmatprep.subr.bf16.mxu0 %v791_v14  ;;  %p938_p6 = pnand %p937_p4, %p1150_p10  ;;  %s942_s6 = scalar_lea.vmem %s941_s4, 512 }
  0x61   : > { %756 = vmatmul.mubr.msk.f32.vlgmr.msra.gmra.mrb[0].mxu1 %vm234_vm0, %v714_v13  ;;  %p943_p12 = scmp.lt.s32.totalorder %s1244_s11, %s941_s4  ;;  %p944_p11 = scmp.lt.s32.totalorder %s942_s6, %s936_s21 }
  0x62   : > { %770 = vmatmul.mubr.msk.f32.vlgmr.msra.gmra.mrb[0].mxu0 %vm234_vm0, %v720_v15  ;;  %786 = vmatpush3.bf16.msra.mxu1 %v783_v10  ;;  %p939_p8 = pneg %p938_p6 }
  0x63   : > { %794 = vmatpush3.bf16.msra.mxu0 %v791_v14  ;;  %762 = vmatprep.mubr.msk.f32.mxu1 %vm234_vm0, %v224_v16  ;;  %p945_p0 = por %p944_p11, %p943_p12 }
  0x64   : > { %776 = vmatprep.mubr.msk.f32.mxu0 %vm234_vm0, %v723_v17 }
  0x65   : > { %p946_p5 = pnand %p945_p0, %p939_p8 }
  0x69   : > { %763 = vmatmul.mubr.msk.f32.vlgmr.msra.gmra.mrb[0].mxu1 %vm234_vm0, %v225_v18 }
  0x6a   : > { %777 = vmatmul.mubr.msk.f32.vlgmr.msra.gmra.mrb[0].mxu0 %vm234_vm0, %v724_v19 }
 0x13c   : > { %v764_v20 = vpop.f32.mrb[0].mxu1 }
 0x13d   : > { %v778_v21 = vpop.f32.mrb[0].mxu0  ;;  %v388_v23 = vpop.f32.mrb[1].mxu1 }
 0x13e   : > { %v795_v24 = vadd.f32 %v778_v21, %v764_v20  ;;  %v564_v25 = vpop.f32.mrb[1].mxu0 }
 0x13f   : > { %v796_v26 = vadd.f32 %v564_v25, %v388_v23 }
 0x140   : > { %v583_v27 = vadd.f32 %v795_v24, %v727_v22 }
 0x141   : > { %v582_v28 = vadd.f32 %v796_v26, %v727_v22 }
 0x142   : > { %v585_v29 = vmax.f32 %v583_v27, 0.0 }
 0x143   : > { %v584_v30 = vmax.f32 %v582_v28, 0.0 }
 0x144   : > { %587 = vst [vmem:[%s221_s10 + $0x8] sm:$0xff] %v585_v29 }
 0x145   : > { %586 = vst [vmem:[%s221_s10] sm:$0xff] %v584_v30 }
 0x146   : > { %949 = shalt.err (!%p946_p5)
}
 0x147   : > { %s950_s29 = scalar_lea.hbm %s1249_s25, 256  ;;  %s954_s20 = scalar_lea.hbm %s1301_s3, 512 }
 0x148   : > { %p951_p9 = scmp.ne.s32.totalorder %s1249_s25, %s950_s29  ;;  %p955_p3 = scmp.lt.u32.totalorder %s1249_s25, %s1301_s3 }
 0x149   : > { %p956_p7 = scmp.lt.u32.totalorder %s954_s20, %s950_s29  ;;  %p958_p4 = scmp.lt.u32.totalorder %s950_s29, %s1249_s25 }
 0x14a   : > { %p952_p1 = pnand %p951_p9, %p1150_p10 }
 0x14b   : > { %p957_p13 = por %p956_p7, %p955_p3 }
 0x14c   : > { %p953_p2 = pneg %p952_p1 }
 0x14d   : > { %p959_p6 = por %p958_p4, %p957_p13 }
 0x14f   : > { %p960_p8 = pnand %p959_p6, %p953_p2 }
 0x151   : > { %963 = shalt.err (!%p960_p8)
}
 0x152   : > { %s1029_s10 = smov 128   ;;  %s1030_s9 = smov 8  }
 0x153   : > { %807 = dma.vmem_to_hbm [thread:$0]  (%p1150_p10), %s1244_s11, 256, %s1249_s25, %s589_s26, %s1029_s10, %s1029_s10, %s1030_s9  }
 0x154 PF: > { %s619_s18 = sand.u32 1, %s1002_s12   ;;  %p1319_p12 = scmp.ne.s32.totalorder %s1309_s23, 0 }
 0x155   : > { %p1320_p11 = scmp.ge.s32.totalorder %s1022_s17, 2  ;;  %s620_s19 = scalar_lea.sflag [#allocation4], %s619_s18 }
 0x157   : > { %p818_p0 = pnand %p1320_p11, %p1319_p12 }
 0x159   : > { %997 = dma.done.wait (!%p818_p0), %s620_s19, 256  }
 0x15a   : > { %999 = vsyncadd (!%p818_p0), %s620_s19, 4294967040  ;;  %s20_s17 = sadd.s32 1, %s1022_s17   ;;  %s1321_s12 = smov %s1006_s13 }
 0x15b   : > { %p17_p5 = scmp.ge.s32.totalorder %s20_s17, 4   ;;  %s1322_s13 = smov %s1010_s14 }
 0x15c   : > { %s1323_s14 = smov %s1159_s5  ;;  %s1324_s15 = smov %s1018_s16 }
 0x15d   : > { %s1325_s16 = smov %s1327_s28  ;;  %19 = sbr.rel (!%p17_p5) target bundleno = 7 (0x7), region = 87 }
 0x164   :  { %625 = vsyncpa [#allocation3], 1 }
 0x165   :  { %627 = vsyncpa [#allocation3 + $0x1], 1 }
 0x166   :  { %628 = vsyncpa [#allocation6], 1 }
 0x167   :  { %629 = vsyncpa [#allocation4], 1 }
 0x168   :  { %631 = vsyncpa [#allocation4 + $0x1], 1 }

</bundles_post_ra>
